<compile_context>
chip_gen: v7x
topology: tpu7x:2x2x1
jax: 0.10.0
libtpu: 0.0.40
codegen_flags: <defaults>
</compile_context>

<pallas_src>
from functools import partial

import jax
import jax.numpy as jnp
import numpy as np
from jax.experimental import pallas as pl
from jax.experimental.pallas import tpu as pltpu

HIDDEN = 20  # hidden width of all the tiny MLPs in the module


def _model_kernel(mxu_dtype,
                  x_ref, w1p_ref, b1p_ref, w2c_ref, w3c_ref,          # packed per-scalar params
                  w1u_ref, b1u_ref, w2u_ref, b2u_ref, w3u_ref, b3u_ref,  # Supporter
                  out_ref, y2_ref, w_ref, xz_ref):
    tb, D = x_ref.shape
    K2, P = w2c_ref.shape                 # K2 = H+2, P = 2H+1
    C = w3c_ref.shape[0]
    H = (P - 1) // 2
    f32 = jnp.float32

    x = x_ref[...]                                                      # (tb, D)

    # ---- fused layer-1 (Selector ++ Explainer ++ constant-1 channel), D lane-dense
    h1 = jnp.maximum(x[:, None, :] * w1p_ref[...] + b1p_ref[...], 0.0)  # (tb, P, D)

    # ---- fused layer-2 on the MXU (flash-attention-style batched einsum):
    #      rows 0..H-1 = explainer hidden pre-activation (bias folded in),
    #      row  H      = constant 1 (layer-3 bias carrier),
    #      row  H+1    = selector logit (selector layer-2 folded in).
    w2b = jnp.broadcast_to(w2c_ref[...][None], (tb, K2, P)).astype(mxu_dtype)
    mid = jnp.einsum("bkp,bpd->bkd", w2b, h1.astype(mxu_dtype),
                     preferred_element_type=f32)                        # (tb, K2, D)

    sel = mid[:, H + 1, :]                                              # (tb, D) selector logit
    Z = jax.nn.sigmoid(sel)
    # eval-mode path: Z = probs.
    # TODO(synk): training-mode Sample_Concrete (Gumbel concrete sampling of Z)
    # is not implemented; only the inference path is.

    xz = x * Z                                                          # (tb, D)
    xz_ref[...] = xz                                                    # full-slab, lane-dense store

    # ---- Supporter MLP: row-batched 2-D MXU matmuls (tiny; not the bottleneck)
    s1 = jnp.maximum(
        jnp.dot(xz, w1u_ref[...], preferred_element_type=f32) + b1u_ref[...], 0.0)   # (tb, H)
    s2 = jnp.maximum(
        jnp.dot(s1, w2u_ref[...], preferred_element_type=f32) + b2u_ref[...], 0.0)   # (tb, H)
    y2_ref[...] = jnp.dot(s2, w3u_ref[...], preferred_element_type=f32) + b3u_ref[...]  # (tb, C)

    # ---- Explainer layer-3, produced directly in (tb, C, D): no transpose, no reshape
    e2 = jnp.maximum(mid, 0.0)          # relu; constant row stays 1, selector row has 0 weight in w3c
    w3b = jnp.broadcast_to(w3c_ref[...][None], (tb, C, K2)).astype(mxu_dtype)
    w_bcd = jnp.einsum("bck,bkd->bcd", w3b, e2.astype(mxu_dtype),
                       preferred_element_type=f32)                      # (tb, C, D)
    w_ref[...] = w_bcd                                                  # lane-dense W store

    # ---- scores = W @ Z (lane reduce over D), softmax over classes
    scores = jnp.sum(w_bcd * Z[:, None, :], axis=-1)                    # (tb, C)
    m = jnp.max(scores, axis=-1, keepdims=True)
    ex = jnp.exp(scores - m)
    denom = jnp.sum(ex, axis=-1, keepdims=True)
    r = pl.reciprocal(denom, approx=True)                               # EUP slot
    r = r * (2.0 - denom * r)                                           # one Newton step -> f32-accurate
    out_ref[...] = ex * r


def _vmem_limit_bytes():
    try:
        cap = int(getattr(pltpu.get_tpu_info(), "vmem_capacity_bytes", 64 * 2**20))
    except Exception:
        cap = 64 * 2**20                 # conservative (v7x per-TC VMEM)
    return min(int(cap * 0.75), 100 * 2**20)


def _choose_block_b(B, D, C, H, vmem_limit, block_b_cap):
    """Pick the batch tile: as large as VMEM allows, >= 2 grid steps when the
    batch is big enough (so the 'parallel' axis shards across v7x's 2 TCs)."""
    pad8 = lambda n: ((n + 7) // 8) * 8
    P, K2 = 2 * H + 1, H + 2
    # rough per-row f32 footprint of the dominant intermediates (h1, mid, e2,
    # W (x2 for double-buffered output), xz/x, plus broadcast weight slabs)
    row_bytes = 4 * (D * (pad8(P) + 2 * pad8(K2) + 2 * pad8(C) + 4)
                     + pad8(K2) * 128 + pad8(C) * 128)
    budget = vmem_limit // 3
    tb = max(8, min(block_b_cap, budget // max(row_bytes, 1)))
    tb = (tb // 8) * 8
    if B <= tb:
        if B >= 16:
            tb = pad8((B + 1) // 2)      # force >= 2 grid steps (v7x megacore)
            if tb >= B:
                tb = B
        else:
            tb = B                        # single block == full array dims (BlockSpec-legal)
    return tb


def model_forward(x, params, cls_fn, *, block_b=256, mxu_dtype=jnp.float32):
    """x: (B, D) float32.  Returns (out, y1, y2, W) matching the PyTorch model."""
    B, D = x.shape
    H = params["sel_w1"].shape[0]
    C = params["sup_w3"].shape[0]
    P = 2 * H + 1                        # selector hidden ++ explainer hidden ++ constant-1 channel
    K2 = H + 2                           # explainer hidden ++ constant-1 row ++ selector-logit row
    f32 = jnp.float32

    # ---- pack the tiny per-scalar params (biases folded via the constant-1 channel)
    w1p = jnp.concatenate([params["sel_w1"][:, 0], params["exp_w1"][:, 0],
                           jnp.zeros((1,), f32)]).reshape(1, P, 1)
    b1p = jnp.concatenate([params["sel_b1"], params["exp_b1"],
                           jnp.ones((1,), f32)]).reshape(1, P, 1)

    w2c = jnp.zeros((K2, P), f32)
    w2c = w2c.at[:H, H:2 * H].set(params["exp_w2"])       # explainer layer-2 weights
    w2c = w2c.at[:H, 2 * H].set(params["exp_b2"])         # explainer layer-2 bias
    w2c = w2c.at[H, 2 * H].set(1.0)                       # constant-1 row (layer-3 bias carrier)
    w2c = w2c.at[H + 1, :H].set(params["sel_w2"][0])      # selector layer-2 weights
    w2c = w2c.at[H + 1, 2 * H].set(params["sel_b2"][0])   # selector layer-2 bias

    w3c = jnp.zeros((C, K2), f32)
    w3c = w3c.at[:, :H].set(params["exp_w3"])
    w3c = w3c.at[:, H].set(params["exp_b3"])              # explainer layer-3 bias

    # Supporter weights pre-transposed to (in, out); biases as row vectors.
    w1u = params["sup_w1"].T;  b1u = params["sup_b1"].reshape(1, H)
    w2u = params["sup_w2"].T;  b2u = params["sup_b2"].reshape(1, H)
    w3u = params["sup_w3"].T;  b3u = params["sup_b3"].reshape(1, C)

    weights = [w1p, b1p, w2c, w3c, w1u, b1u, w2u, b2u, w3u, b3u]

    vmem_limit = _vmem_limit_bytes()
    tb = _choose_block_b(B, D, C, H, vmem_limit, block_b)
    grid = (pl.cdiv(B, tb),)
    # NOTE: D is not padded to a multiple of 128 here; the restructure removed
    # the reshape/transpose concerns, and padding would add wrapper HBM traffic.

    def const_spec(a):
        nd = a.ndim
        return pl.BlockSpec(a.shape, lambda i, _nd=nd: (0,) * _nd)

    in_specs = ([pl.BlockSpec((tb, D), lambda i: (i, 0))]
                + [const_spec(w) for w in weights])
    out_specs = (
        pl.BlockSpec((tb, C), lambda i: (i, 0)),           # out = softmax(W @ Z)
        pl.BlockSpec((tb, C), lambda i: (i, 0)),           # y2 (supporter)
        pl.BlockSpec((tb, C, D), lambda i: (i, 0, 0)),     # W, already (B, C, D)
        pl.BlockSpec((tb, D), lambda i: (i, 0)),           # xz (for the external cls)
    )

    out, y2, W, xz = pl.pallas_call(
        partial(_model_kernel, mxu_dtype),
        out_shape=(
            jax.ShapeDtypeStruct((B, C), f32),
            jax.ShapeDtypeStruct((B, C), f32),
            jax.ShapeDtypeStruct((B, C, D), f32),
            jax.ShapeDtypeStruct((B, D), f32),
        ),
        grid=grid,
        in_specs=in_specs,
        out_specs=out_specs,
        compiler_params=pltpu.CompilerParams(
            dimension_semantics=("parallel",),              # batch grid shards across TCs (v7x)
            vmem_limit_bytes=int(vmem_limit)),
    )(x, *weights)

    y1 = cls_fn(xz)                                         # external black-box classifier stub
    return out, y1, y2, W


def init_params(key, D, C, H=HIDDEN):
    """Deterministic PyTorch-style uniform(-1/sqrt(fan_in), +1/sqrt(fan_in)) init,
    stored in torch (out, in) layouts."""
    def u(k, shape, fan_in):
        b = float(fan_in) ** -0.5
        return jax.random.uniform(k, shape, jnp.float32, -b, b)

    ks = jax.random.split(key, 16)
    return dict(
        # Selector: Linear(1,H) -> ReLU -> Linear(H,1) -> Sigmoid
        sel_w1=u(ks[0], (H, 1), 1),  sel_b1=u(ks[1], (H,), 1),
        sel_w2=u(ks[2], (1, H), H),  sel_b2=u(ks[3], (1,), H),
        # Supporter: Linear(D,H) -> ReLU -> Linear(H,H) -> ReLU -> Linear(H,C)
        sup_w1=u(ks[4], (H, D), D),  sup_b1=u(ks[5], (H,), D),
        sup_w2=u(ks[6], (H, H), H),  sup_b2=u(ks[7], (H,), H),
        sup_w3=u(ks[8], (C, H), H),  sup_b3=u(ks[9], (C,), H),
        # Explainer: Linear(1,H) -> ReLU -> Linear(H,H) -> ReLU -> Linear(H,C)
        exp_w1=u(ks[10], (H, 1), 1), exp_b1=u(ks[11], (H,), 1),
        exp_w2=u(ks[12], (H, H), H), exp_b2=u(ks[13], (H,), H),
        exp_w3=u(ks[14], (C, H), H), exp_b3=u(ks[15], (C,), H),
    )


def reference_forward(x, p, cls_fn):
    """Pure-JAX reference matching the PyTorch eval-mode forward."""
    e = x[..., None]                                                    # (B, D, 1)
    sh = jax.nn.relu(e * p["sel_w1"][:, 0] + p["sel_b1"])               # (B, D, H)
    probs = jax.nn.sigmoid(sh @ p["sel_w2"][0] + p["sel_b2"][0])        # (B, D)
    Z = probs                                                           # eval mode
    xz = x * Z
    s1 = jax.nn.relu(xz @ p["sup_w1"].T + p["sup_b1"])
    s2 = jax.nn.relu(s1 @ p["sup_w2"].T + p["sup_b2"])
    y2 = s2 @ p["sup_w3"].T + p["sup_b3"]
    e1 = jax.nn.relu(e * p["exp_w1"][:, 0] + p["exp_b1"])               # (B, D, H)
    e2 = jax.nn.relu(e1 @ p["exp_w2"].T + p["exp_b2"])                  # (B, D, H)
    we = e2 @ p["exp_w3"].T + p["exp_b3"]                               # (B, D, C)
    W = jnp.transpose(we, (0, 2, 1))                                    # (B, C, D)
    scores = jnp.einsum("bcd,bd->bc", W, Z)
    out = jax.nn.softmax(scores, axis=-1)
    y1 = cls_fn(xz)
    return out, y1, y2, W


if __name__ == "__main__":
    B, D, C = 2, 16, 4
    key = jax.random.PRNGKey(0)
    kx, kp, kc = jax.random.split(key, 3)

    x = jax.random.normal(kx, (B, D), jnp.float32)
    params = init_params(kp, D, C)

    # Deterministic stand-in for the external `cls` black-box classifier
    # (original code calls it on a detached numpy copy of xz).
    Wc = jax.random.normal(kc, (D, C), jnp.float32) * 0.1
    cls_fn = lambda xz: jax.nn.softmax(xz @ Wc, axis=-1)

    out, y1, y2, W = jax.block_until_ready(model_forward(x, params, cls_fn))

    ro, r1, r2, rW = reference_forward(x, params, cls_fn)
    np.testing.assert_allclose(np.asarray(y2), np.asarray(r2), rtol=1e-3, atol=1e-4)
    np.testing.assert_allclose(np.asarray(W), np.asarray(rW), rtol=1e-3, atol=1e-4)
    np.testing.assert_allclose(np.asarray(y1), np.asarray(r1), rtol=1e-3, atol=1e-4)
    # `out` goes through the EUP approx-reciprocal (+1 Newton step): keep a hair of slack.
    np.testing.assert_allclose(np.asarray(out), np.asarray(ro), rtol=1e-3, atol=2e-4)
    assert out.shape == (B, C) and y1.shape == (B, C) and y2.shape == (B, C) and W.shape == (B, C, D)

    print("KERNEL_OK")
</pallas_src>

<mosaic_0001>
module attributes {stable_mosaic.version = 11 : i64} {
  func.func @_model_kernel(%arg0: i32, %arg1: memref<2x16xf32, #tpu.memory_space<vmem>>, %arg2: memref<1x41x1xf32, #tpu.memory_space<vmem>>, %arg3: memref<1x41x1xf32, #tpu.memory_space<vmem>>, %arg4: memref<22x41xf32, #tpu.memory_space<vmem>>, %arg5: memref<4x22xf32, #tpu.memory_space<vmem>>, %arg6: memref<16x20xf32, #tpu.memory_space<vmem>>, %arg7: memref<1x20xf32, #tpu.memory_space<vmem>>, %arg8: memref<20x20xf32, #tpu.memory_space<vmem>>, %arg9: memref<1x20xf32, #tpu.memory_space<vmem>>, %arg10: memref<20x4xf32, #tpu.memory_space<vmem>>, %arg11: memref<1x4xf32, #tpu.memory_space<vmem>>, %arg12: memref<2x4xf32, #tpu.memory_space<vmem>>, %arg13: memref<2x4xf32, #tpu.memory_space<vmem>>, %arg14: memref<2x4x16xf32, #tpu.memory_space<vmem>>, %arg15: memref<2x16xf32, #tpu.memory_space<vmem>>) attributes {dimension_semantics = [#tpu.dimension_semantics<parallel>], iteration_bounds = array<i64: 1>, scalar_prefetch = 0 : i64, scratch_operands = 0 : i64, tpu.core_type = #tpu.core_type<tc>, window_params = [{transform_indices = @transform_0, window_bounds = array<i64: 2, 16>}, {pipeline_mode = #tpu.pipeline_mode<synchronous>, transform_indices = @transform_1, window_bounds = array<i64: 1, 41, 1>}, {pipeline_mode = #tpu.pipeline_mode<synchronous>, transform_indices = @transform_2, window_bounds = array<i64: 1, 41, 1>}, {pipeline_mode = #tpu.pipeline_mode<synchronous>, transform_indices = @transform_3, window_bounds = array<i64: 22, 41>}, {pipeline_mode = #tpu.pipeline_mode<synchronous>, transform_indices = @transform_4, window_bounds = array<i64: 4, 22>}, {pipeline_mode = #tpu.pipeline_mode<synchronous>, transform_indices = @transform_5, window_bounds = array<i64: 16, 20>}, {pipeline_mode = #tpu.pipeline_mode<synchronous>, transform_indices = @transform_6, window_bounds = array<i64: 1, 20>}, {pipeline_mode = #tpu.pipeline_mode<synchronous>, transform_indices = @transform_7, window_bounds = array<i64: 20, 20>}, {pipeline_mode = #tpu.pipeline_mode<synchronous>, transform_indices = @transform_8, window_bounds = array<i64: 1, 20>}, {pipeline_mode = #tpu.pipeline_mode<synchronous>, transform_indices = @transform_9, window_bounds = array<i64: 20, 4>}, {pipeline_mode = #tpu.pipeline_mode<synchronous>, transform_indices = @transform_10, window_bounds = array<i64: 1, 4>}, {transform_indices = @transform_11, window_bounds = array<i64: 2, 4>}, {transform_indices = @transform_12, window_bounds = array<i64: 2, 4>}, {transform_indices = @transform_13, window_bounds = array<i64: 2, 4, 16>}, {transform_indices = @transform_14, window_bounds = array<i64: 2, 16>}]} {
    %c0 = arith.constant 0 : index
    %c0_0 = arith.constant 0 : index
    %0 = vector.load %arg1[%c0, %c0_0] : memref<2x16xf32, #tpu.memory_space<vmem>>, vector<2x16xf32>
    %1 = vector.shape_cast %0 : vector<2x16xf32> to vector<2x1x16xf32>
    %c0_1 = arith.constant 0 : index
    %c0_2 = arith.constant 0 : index
    %c0_3 = arith.constant 0 : index
    %2 = vector.load %arg2[%c0_1, %c0_2, %c0_3] : memref<1x41x1xf32, #tpu.memory_space<vmem>>, vector<1x41x1xf32>
    %3 = vector.broadcast %1 : vector<2x1x16xf32> to vector<2x41x16xf32>
    %4 = vector.broadcast %2 : vector<1x41x1xf32> to vector<2x41x16xf32>
    %5 = arith.mulf %3, %4 : vector<2x41x16xf32>
    %c0_4 = arith.constant 0 : index
    %c0_5 = arith.constant 0 : index
    %c0_6 = arith.constant 0 : index
    %6 = vector.load %arg3[%c0_4, %c0_5, %c0_6] : memref<1x41x1xf32, #tpu.memory_space<vmem>>, vector<1x41x1xf32>
    %7 = vector.broadcast %6 : vector<1x41x1xf32> to vector<2x41x16xf32>
    %8 = arith.addf %5, %7 : vector<2x41x16xf32>
    %cst = arith.constant 0.000000e+00 : f32
    %9 = vector.broadcast %cst : f32 to vector<2x41x16xf32>
    %10 = arith.maximumf %8, %9 : vector<2x41x16xf32>
    %c0_7 = arith.constant 0 : index
    %c0_8 = arith.constant 0 : index
    %11 = vector.load %arg4[%c0_7, %c0_8] : memref<22x41xf32, #tpu.memory_space<vmem>>, vector<22x41xf32>
    %12 = vector.shape_cast %11 : vector<22x41xf32> to vector<1x22x41xf32>
    %13 = vector.shape_cast %12 : vector<1x22x41xf32> to vector<1x22x41xf32>
    %14 = vector.broadcast %13 : vector<1x22x41xf32> to vector<2x22x41xf32>
    "tpu.trace_start"() <{level = 10 : i32, message = "bkp,bpd->bkd"}> : () -> ()
    %cst_9 = arith.constant dense<0.000000e+00> : vector<2x22x16xf32>
    %15 = tpu.matmul %14, %10, %cst_9 {dimension_numbers = #tpu.dot_dimension_numbers<[2], [1], [1], [2], [0, 0, 0, 1, 1, 2], [0], [0]>} : vector<2x22x41xf32>, vector<2x41x16xf32>, vector<2x22x16xf32> -> vector<2x22x16xf32>
    "tpu.trace_stop"() : () -> ()
    %16 = vector.extract_strided_slice %15 {offsets = [0, 21, 0], sizes = [2, 1, 16], strides = [1, 1, 1]} : vector<2x22x16xf32> to vector<2x1x16xf32>
    %17 = vector.shape_cast %16 : vector<2x1x16xf32> to vector<2x16xf32>
    %18 = arith.negf %17 : vector<2x16xf32>
    %19 = math.exp %18 : vector<2x16xf32>
    %cst_10 = arith.constant 1.000000e+00 : f32
    %20 = vector.broadcast %cst_10 : f32 to vector<2x16xf32>
    %21 = arith.addf %20, %19 : vector<2x16xf32>
    %22 = arith.divf %20, %21 : vector<2x16xf32>
    %23 = arith.mulf %0, %22 : vector<2x16xf32>
    %c0_11 = arith.constant 0 : index
    %c0_12 = arith.constant 0 : index
    %24 = vector.load %arg15[%c0_11, %c0_12] : memref<2x16xf32, #tpu.memory_space<vmem>>, vector<2x16xf32>
    tpu.vector_store %arg15[%c0_11, %c0_12], %23 {strides = array<i32>} : memref<2x16xf32, #tpu.memory_space<vmem>>, vector<2x16xf32>,
    %c0_13 = arith.constant 0 : index
    %c0_14 = arith.constant 0 : index
    %25 = vector.load %arg6[%c0_13, %c0_14] : memref<16x20xf32, #tpu.memory_space<vmem>>, vector<16x20xf32>
    %cst_15 = arith.constant dense<0.000000e+00> : vector<2x20xf32>
    %26 = tpu.matmul %23, %25, %cst_15 {dimension_numbers = #tpu.dot_dimension_numbers<[1], [0], [0], [1], [0, 0, 1, 1], [], []>} : vector<2x16xf32>, vector<16x20xf32>, vector<2x20xf32> -> vector<2x20xf32>
    %c0_16 = arith.constant 0 : index
    %c0_17 = arith.constant 0 : index
    %27 = vector.load %arg7[%c0_16, %c0_17] : memref<1x20xf32, #tpu.memory_space<vmem>>, vector<1x20xf32>
    %28 = vector.broadcast %27 : vector<1x20xf32> to vector<2x20xf32>
    %29 = arith.addf %26, %28 : vector<2x20xf32>
    %cst_18 = arith.constant 0.000000e+00 : f32
    %30 = vector.broadcast %cst_18 : f32 to vector<2x20xf32>
    %31 = arith.maximumf %29, %30 : vector<2x20xf32>
    %c0_19 = arith.constant 0 : index
    %c0_20 = arith.constant 0 : index
    %32 = vector.load %arg8[%c0_19, %c0_20] : memref<20x20xf32, #tpu.memory_space<vmem>>, vector<20x20xf32>
    %cst_21 = arith.constant dense<0.000000e+00> : vector<2x20xf32>
    %33 = tpu.matmul %31, %32, %cst_21 {dimension_numbers = #tpu.dot_dimension_numbers<[1], [0], [0], [1], [0, 0, 1, 1], [], []>} : vector<2x20xf32>, vector<20x20xf32>, vector<2x20xf32> -> vector<2x20xf32>
    %c0_22 = arith.constant 0 : index
    %c0_23 = arith.constant 0 : index
    %34 = vector.load %arg9[%c0_22, %c0_23] : memref<1x20xf32, #tpu.memory_space<vmem>>, vector<1x20xf32>
    %35 = vector.broadcast %34 : vector<1x20xf32> to vector<2x20xf32>
    %36 = arith.addf %33, %35 : vector<2x20xf32>
    %cst_24 = arith.constant 0.000000e+00 : f32
    %37 = vector.broadcast %cst_24 : f32 to vector<2x20xf32>
    %38 = arith.maximumf %36, %37 : vector<2x20xf32>
    %c0_25 = arith.constant 0 : index
    %c0_26 = arith.constant 0 : index
    %39 = vector.load %arg10[%c0_25, %c0_26] : memref<20x4xf32, #tpu.memory_space<vmem>>, vector<20x4xf32>
    %cst_27 = arith.constant dense<0.000000e+00> : vector<2x4xf32>
    %40 = tpu.matmul %38, %39, %cst_27 {dimension_numbers = #tpu.dot_dimension_numbers<[1], [0], [0], [1], [0, 0, 1, 1], [], []>} : vector<2x20xf32>, vector<20x4xf32>, vector<2x4xf32> -> vector<2x4xf32>
    %c0_28 = arith.constant 0 : index
    %c0_29 = arith.constant 0 : index
    %41 = vector.load %arg11[%c0_28, %c0_29] : memref<1x4xf32, #tpu.memory_space<vmem>>, vector<1x4xf32>
    %42 = vector.broadcast %41 : vector<1x4xf32> to vector<2x4xf32>
    %43 = arith.addf %40, %42 : vector<2x4xf32>
    %c0_30 = arith.constant 0 : index
    %c0_31 = arith.constant 0 : index
    %44 = vector.load %arg13[%c0_30, %c0_31] : memref<2x4xf32, #tpu.memory_space<vmem>>, vector<2x4xf32>
    tpu.vector_store %arg13[%c0_30, %c0_31], %43 {strides = array<i32>} : memref<2x4xf32, #tpu.memory_space<vmem>>, vector<2x4xf32>,
    %cst_32 = arith.constant 0.000000e+00 : f32
    %45 = vector.broadcast %cst_32 : f32 to vector<2x22x16xf32>
    %46 = arith.maximumf %15, %45 : vector<2x22x16xf32>
    %c0_33 = arith.constant 0 : index
    %c0_34 = arith.constant 0 : index
    %47 = vector.load %arg5[%c0_33, %c0_34] : memref<4x22xf32, #tpu.memory_space<vmem>>, vector<4x22xf32>
    %48 = vector.shape_cast %47 : vector<4x22xf32> to vector<1x4x22xf32>
    %49 = vector.shape_cast %48 : vector<1x4x22xf32> to vector<1x4x22xf32>
    %50 = vector.broadcast %49 : vector<1x4x22xf32> to vector<2x4x22xf32>
    "tpu.trace_start"() <{level = 10 : i32, message = "bck,bkd->bcd"}> : () -> ()
    %cst_35 = arith.constant dense<0.000000e+00> : vector<2x4x16xf32>
    %51 = tpu.matmul %50, %46, %cst_35 {dimension_numbers = #tpu.dot_dimension_numbers<[2], [1], [1], [2], [0, 0, 0, 1, 1, 2], [0], [0]>} : vector<2x4x22xf32>, vector<2x22x16xf32>, vector<2x4x16xf32> -> vector<2x4x16xf32>
    "tpu.trace_stop"() : () -> ()
    %c0_36 = arith.constant 0 : index
    %c0_37 = arith.constant 0 : index
    %c0_38 = arith.constant 0 : index
    %52 = vector.load %arg14[%c0_36, %c0_37, %c0_38] : memref<2x4x16xf32, #tpu.memory_space<vmem>>, vector<2x4x16xf32>
    tpu.vector_store %arg14[%c0_36, %c0_37, %c0_38], %51 {strides = array<i32>} : memref<2x4x16xf32, #tpu.memory_space<vmem>>, vector<2x4x16xf32>,
    %53 = vector.shape_cast %22 : vector<2x16xf32> to vector<2x1x16xf32>
    %54 = vector.broadcast %53 : vector<2x1x16xf32> to vector<2x4x16xf32>
    %55 = arith.mulf %51, %54 : vector<2x4x16xf32>
    %cst_39 = arith.constant dense<0.000000e+00> : vector<2x4xf32>
    %56 = vector.multi_reduction <add>, %55, %cst_39 [2] : vector<2x4x16xf32> to vector<2x4xf32>
    %cst_40 = arith.constant dense<0xFF800000> : vector<2xf32>
    %57 = vector.multi_reduction <maximumf>, %56, %cst_40 [1] : vector<2x4xf32> to vector<2xf32>
    %58 = vector.shape_cast %57 : vector<2xf32> to vector<2x1xf32>
    %59 = vector.broadcast %58 : vector<2x1xf32> to vector<2x4xf32>
    %60 = arith.subf %56, %59 : vector<2x4xf32>
    %61 = math.exp %60 : vector<2x4xf32>
    %cst_41 = arith.constant dense<0.000000e+00> : vector<2xf32>
    %62 = vector.multi_reduction <add>, %61, %cst_41 [1] : vector<2x4xf32> to vector<2xf32>
    %63 = vector.shape_cast %62 : vector<2xf32> to vector<2x1xf32>
    %64 = tpu.reciprocal %63 {approx = true} : vector<2x1xf32> -> vector<2x1xf32>
    %65 = arith.mulf %63, %64 : vector<2x1xf32>
    %cst_42 = arith.constant 2.000000e+00 : f32
    %66 = vector.broadcast %cst_42 : f32 to vector<2x1xf32>
    %67 = arith.subf %66, %65 : vector<2x1xf32>
    %68 = arith.mulf %64, %67 : vector<2x1xf32>
    %69 = vector.broadcast %68 : vector<2x1xf32> to vector<2x4xf32>
    %70 = arith.mulf %61, %69 : vector<2x4xf32>
    %c0_43 = arith.constant 0 : index
    %c0_44 = arith.constant 0 : index
    %71 = vector.load %arg12[%c0_43, %c0_44] : memref<2x4xf32, #tpu.memory_space<vmem>>, vector<2x4xf32>
    tpu.vector_store %arg12[%c0_43, %c0_44], %70 {strides = array<i32>} : memref<2x4xf32, #tpu.memory_space<vmem>>, vector<2x4xf32>,
    return
  }
  func.func @transform_0(%arg0: i32) -> (i32, i32) {
    %c0_i32 = arith.constant 0 : i32
    %c0_i32_0 = arith.constant 0 : i32
    return %arg0, %c0_i32 : i32, i32
  }
  func.func @transform_1(%arg0: i32) -> (i32, i32, i32) {
    %c0_i32 = arith.constant 0 : i32
    %c0_i32_0 = arith.constant 0 : i32
    %c0_i32_1 = arith.constant 0 : i32
    %c0_i32_2 = arith.constant 0 : i32
    return %c0_i32, %c0_i32_0, %c0_i32_1 : i32, i32, i32
  }
  func.func @transform_2(%arg0: i32) -> (i32, i32, i32) {
    %c0_i32 = arith.constant 0 : i32
    %c0_i32_0 = arith.constant 0 : i32
    %c0_i32_1 = arith.constant 0 : i32
    %c0_i32_2 = arith.constant 0 : i32
    return %c0_i32, %c0_i32_0, %c0_i32_1 : i32, i32, i32
  }
  func.func @transform_3(%arg0: i32) -> (i32, i32) {
    %c0_i32 = arith.constant 0 : i32
    %c0_i32_0 = arith.constant 0 : i32
    %c0_i32_1 = arith.constant 0 : i32
    return %c0_i32, %c0_i32_0 : i32, i32
  }
  func.func @transform_4(%arg0: i32) -> (i32, i32) {
    %c0_i32 = arith.constant 0 : i32
    %c0_i32_0 = arith.constant 0 : i32
    %c0_i32_1 = arith.constant 0 : i32
    return %c0_i32, %c0_i32_0 : i32, i32
  }
  func.func @transform_5(%arg0: i32) -> (i32, i32) {
    %c0_i32 = arith.constant 0 : i32
    %c0_i32_0 = arith.constant 0 : i32
    %c0_i32_1 = arith.constant 0 : i32
    return %c0_i32, %c0_i32_0 : i32, i32
  }
  func.func @transform_6(%arg0: i32) -> (i32, i32) {
    %c0_i32 = arith.constant 0 : i32
    %c0_i32_0 = arith.constant 0 : i32
    %c0_i32_1 = arith.constant 0 : i32
    return %c0_i32, %c0_i32_0 : i32, i32
  }
  func.func @transform_7(%arg0: i32) -> (i32, i32) {
    %c0_i32 = arith.constant 0 : i32
    %c0_i32_0 = arith.constant 0 : i32
    %c0_i32_1 = arith.constant 0 : i32
    return %c0_i32, %c0_i32_0 : i32, i32
  }
  func.func @transform_8(%arg0: i32) -> (i32, i32) {
    %c0_i32 = arith.constant 0 : i32
    %c0_i32_0 = arith.constant 0 : i32
    %c0_i32_1 = arith.constant 0 : i32
    return %c0_i32, %c0_i32_0 : i32, i32
  }
  func.func @transform_9(%arg0: i32) -> (i32, i32) {
    %c0_i32 = arith.constant 0 : i32
    %c0_i32_0 = arith.constant 0 : i32
    %c0_i32_1 = arith.constant 0 : i32
    return %c0_i32, %c0_i32_0 : i32, i32
  }
  func.func @transform_10(%arg0: i32) -> (i32, i32) {
    %c0_i32 = arith.constant 0 : i32
    %c0_i32_0 = arith.constant 0 : i32
    %c0_i32_1 = arith.constant 0 : i32
    return %c0_i32, %c0_i32_0 : i32, i32
  }
  func.func @transform_11(%arg0: i32) -> (i32, i32) {
    %c0_i32 = arith.constant 0 : i32
    %c0_i32_0 = arith.constant 0 : i32
    return %arg0, %c0_i32 : i32, i32
  }
  func.func @transform_12(%arg0: i32) -> (i32, i32) {
    %c0_i32 = arith.constant 0 : i32
    %c0_i32_0 = arith.constant 0 : i32
    return %arg0, %c0_i32 : i32, i32
  }
  func.func @transform_13(%arg0: i32) -> (i32, i32, i32) {
    %c0_i32 = arith.constant 0 : i32
    %c0_i32_0 = arith.constant 0 : i32
    %c0_i32_1 = arith.constant 0 : i32
    return %arg0, %c0_i32, %c0_i32_0 : i32, i32, i32
  }
  func.func @transform_14(%arg0: i32) -> (i32, i32) {
    %c0_i32 = arith.constant 0 : i32
    %c0_i32_0 = arith.constant 0 : i32
    return %arg0, %c0_i32 : i32, i32
  }
}

</mosaic_0001>

<bundles_post_ra>
// kernel: tpu_custom_call.1
= control target key start
LH: loop header
LB: loop body
LE: loop exit
PB: predicated region body
PF: predicated region fallthrough
CT: control target
= control target key end

     0   :  { %20 = vsyncpa [#allocation3], 0  ;;  %s1589_s0 = inlined_call_operand.vmem [shape: f32[2,16], index: 0, kind: input, shape index: {}]   ;;  %s1590_s1 = inlined_call_operand.vmem [shape: f32[1,41,1], index: 1, kind: input, shape index: {}]   ;;  %s1591_s2 = inlined_call_operand.vmem [shape: f32[1,41,1], index: 2, kind: input, shape index: {}]   ;;  %s1592_s3 = inlined_call_operand.vmem [shape: f32[22,41], index: 3, kind: input, shape index: {}]   ;;  %s1593_s4 = inlined_call_operand.vmem [shape: f32[4,22], index: 4, kind: input, shape index: {}]   ;;  %s1594_s5 = inlined_call_operand.vmem [shape: f32[16,20], index: 5, kind: input, shape index: {}]   ;;  %s1595_s6 = inlined_call_operand.vmem [shape: f32[1,20], index: 6, kind: input, shape index: {}]   ;;  %s1596_s7 = inlined_call_operand.vmem [shape: f32[20,20], index: 7, kind: input, shape index: {}]   ;;  %s1597_s8 = inlined_call_operand.vmem [shape: f32[1,20], index: 8, kind: input, shape index: {}]   ;;  %s1598_s9 = inlined_call_operand.vmem [shape: f32[20,4], index: 9, kind: input, shape index: {}]   ;;  %s1599_s10 = inlined_call_operand.vmem [shape: f32[1,4], index: 10, kind: input, shape index: {}]   ;;  %s1600_s11 = inlined_call_operand.hbm [shape: f32[2,4], index: 11, kind: output, shape index: {0}]   ;;  %s1601_s12 = inlined_call_operand.hbm [shape: f32[2,4], index: 12, kind: output, shape index: {1}]   ;;  %s1602_s13 = inlined_call_operand.hbm [shape: f32[2,4,16], index: 13, kind: output, shape index: {2}]   ;;  %s1603_s14 = inlined_call_operand.hbm [shape: f32[2,16], index: 14, kind: output, shape index: {3}]  }
   0x1   :  { %21 = vsyncpa [#allocation5], 0  ;;  %v127_v0 = vld [vmem:[%s1591_s2] sm:$0xff]  ;;  %v1276_v2 = vmov 0   ;;  %v128_v3 = vld [vmem:[%s1591_s2 + $0x8] sm:$0xff] }
   0x2   :  { %v69_v1 = vld [vmem:[%s1590_s1] sm:$0xff]  ;;  %1167 = vset.pattern.permute.xlu1 %v1276_v2  ;;  %1166 = vset.pattern.permute.xlu0 %v1276_v2  ;;  %v70_v4 = vld [vmem:[%s1590_s1 + $0x8] sm:$0xff] }
   0x3   :  { %135 = vperm.xlu1 %1167, %v127_v0   ;;  %87 = vperm.xlu0 %1166, %v69_v1  }
   0x4   :  { %22 = vsyncpa [#allocation8], 0  ;;  %v72_v5 = vld [vmem:[%s1590_s1 + $0x18] sm:$0xff]  ;;  %v71_v6 = vld [vmem:[%s1590_s1 + $0x10] sm:$0xff]  ;;  %v1277_v9 = vmov 0.0|0.0   ;;  %vm1278_vm0 = vmmov 0   ;;  %v50_v17 = vlaneseq }
   0x5   :  { %v130_v7 = vld [vmem:[%s1591_s2 + $0x18] sm:$0xff]  ;;  %v129_v8 = vld [vmem:[%s1591_s2 + $0x10] sm:$0xff]  ;;  %1119 = vmatprep.subr.bf16.mxu0 %v1277_v9  ;;  %1129 = vmatprep.subr.bf16.mxu1 %v1277_v9  ;;  %v74_v10 = vld [vmem:[%s1590_s1 + $0x28] sm:$0x1]  ;;  %v1279_v14 = vmov 0.0   ;;  %vm200_vm1 = vcmask 1040384  }
   0x6   :  { %v73_v11 = vld [vmem:[%s1590_s1 + $0x20] sm:$0xff]  ;;  %v132_v12 = vld [vmem:[%s1591_s2 + $0x28] sm:$0x1]  ;;  %1046 = vmatprep.mubr.msk.f32.mxu0 %vm1278_vm0, %v1279_v14  ;;  %1067 = vmatprep.mubr.msk.f32.mxu1 %vm1278_vm0, %v1279_v14  ;;  %v1280_v15 = vmov 1966171168   ;;  %v1406_v19 = vshrl.u32 %v50_v17, 7 }
   0x7   :  { %140 = vperm.xlu1 %1167, %v128_v3   ;;  %92 = vperm.xlu0 %1166, %v70_v4   ;;  %v131_v13 = vld [vmem:[%s1591_s2 + $0x20] sm:$0xff]  ;;  %v48_v16 = vunpack.c.l.s4 %v1280_v15  ;;  %vm1281_vm2 = vmmov 1   ;;  %vm190_vm4 = vcmask 334848   ;;  %vm383_vm5 = vcmask 1041409  }
   0x8   :  { %v1412_v21 = vld [vmem:[%s1589_s0] sm:$0x3]  ;;  %v1416_v26 = vsub.s32 0, %v1406_v19  ;;  %vm1127_vm3 = vmpackc.low %vm200_vm1, %vm1281_vm2  ;;  %vm398_vm6 = vcmask 130048   ;;  %vm387_vm7 = vcmask 123904   ;;  %vm487_vm8 = vcmask 1043456  }
   0x9   :  { %v49_v18 = vunpack.c.0.s8 %v48_v16  ;;  %vm483_vm9 = vcmask 162816   ;;  %vm661_vm10 = vcmask 1045504   ;;  %vm657_vm11 = vcmask 179200  }
   0xa   :  { %vm808_vm12 = vcmask 125952   ;;  %vm648_vm13 = vcmask 25600  }
   0xb   :  { %102 = vperm.xlu1 %1167, %v72_v5   ;;  %97 = vperm.xlu0 %1166, %v71_v6   ;;  %v52_v20 = vsub.s32 %v49_v18, %v1406_v19 }
   0xd   :  { %v53_v22 = vrot.slane %v1412_v21, %v52_v20 }
   0xf   :  { %150 = vperm.xlu1 %1167, %v130_v7   ;;  %145 = vperm.xlu0 %1166, %v129_v8   ;;  %v54_v23 = vcombine.high %v53_v22, %v53_v22  ;;  %v61_v24 = vrot.slane %v53_v22, %v52_v20 }
  0x11   :  { %v68_v25 = vrot.slane %v54_v23, %v52_v20  ;;  %v78_v27 = vrot.slane %v61_v24, %v1416_v26  ;;  %v187_v24 = vld [vmem:[%s1592_s3] sm:$0xff] }
  0x13   :  { %112 = vperm.xlu1 %1167, %v74_v10   ;;  %107 = vperm.xlu0 %1166, %v73_v11   ;;  %v82_v28 = vrot.slane %v68_v25, %v1416_v26  ;;  %v188_v25 = vld [vmem:[%s1592_s3 + $0x8] sm:$0xff] }
  0x17   :  { %160 = vperm.xlu1 %1167, %v132_v12   ;;  %155 = vperm.xlu0 %1166, %v131_v13  }
  0x82   :  { %v136_v29 = vpop.permute.xlu1 %135  ;;  %v88_v30 = vpop.permute.xlu0 %87 }
  0x83   :  { %v115_v31 = vmul.f32 %v88_v30, %v78_v27  ;;  %v121_v32 = vmul.f32 %v88_v30, %v82_v28 }
  0x85   :  { %v163_v37 = vadd.f32 %v136_v29, %v115_v31  ;;  %v169_v38 = vadd.f32 %v136_v29, %v121_v32  ;;  %v390_v29 = vld [vmem:[%s1594_s5 + $0x8] sm:$0xff]  ;;  %v473_v31 = vld [vmem:[%s1596_s7] sm:$0xff] }
  0x86   :  { %v141_v33 = vpop.permute.xlu1 %140  ;;  %v93_v34 = vpop.permute.xlu0 %92  ;;  %v474_v32 = vld [vmem:[%s1596_s7 + $0x8] sm:$0xff] }
  0x87   :  { %v116_v35 = vmul.f32 %v93_v34, %v78_v27  ;;  %v122_v36 = vmul.f32 %v93_v34, %v82_v28  ;;  %v175_v43 = vmax.f32 %v163_v37, 0.0  ;;  %v181_v45 = vmax.f32 %v169_v38, 0.0 }
  0x89   :  { %v164_v39 = vadd.f32 %v141_v33, %v116_v35  ;;  %v170_v40 = vadd.f32 %v141_v33, %v122_v36  ;;  %v1143_v33 = vpack.c.bf16 %v474_v32, %v473_v31 }
  0x8a   :  { %v103_v41 = vpop.permute.xlu1 %102  ;;  %v98_v42 = vpop.permute.xlu0 %97 }
  0x8b   :  { %v176_v44 = vmax.f32 %v164_v39, 0.0  ;;  %v182_v46 = vmax.f32 %v170_v40, 0.0  ;;  %v118_v47 = vmul.f32 %v103_v41, %v78_v27  ;;  %v124_v48 = vmul.f32 %v103_v41, %v82_v28 }
  0x8c   :  { %v117_v49 = vmul.f32 %v98_v42, %v78_v27  ;;  %v123_v50 = vmul.f32 %v98_v42, %v82_v28 }
  0x8d   :  { %v1120_v53 = vpack.c.bf16 %v176_v44, %v175_v43  ;;  %v1130_v54 = vpack.c.bf16 %v182_v46, %v181_v45 }
  0x8e   :  { %v151_v51 = vpop.permute.xlu1 %150  ;;  %v146_v52 = vpop.permute.xlu0 %145 }
  0x8f   :  { %v166_v55 = vadd.f32 %v151_v51, %v118_v47  ;;  %v172_v56 = vadd.f32 %v151_v51, %v124_v48  ;;  %v165_v57 = vadd.f32 %v146_v52, %v117_v49  ;;  %v171_v58 = vadd.f32 %v146_v52, %v123_v50  ;;  %1121 = vmatpush3.bf16.msra.mxu0 %v1120_v53 }
  0x90   :  { %1131 = vmatpush3.bf16.msra.mxu1 %v1130_v54  ;;  %1122 = vmatprep.subr.bf16.mxu0 %v1277_v9 }
  0x91   :  { %v178_v59 = vmax.f32 %v166_v55, 0.0  ;;  %v184_v60 = vmax.f32 %v172_v56, 0.0  ;;  %v177_v61 = vmax.f32 %v165_v57, 0.0  ;;  %v183_v62 = vmax.f32 %v171_v58, 0.0  ;;  %1132 = vmatprep.subr.bf16.mxu1 %v1277_v9 }
  0x92   :  { %v113_v63 = vpop.permute.xlu1 %112  ;;  %v108_v0 = vpop.permute.xlu0 %107  ;;  %v813_v58 = vsub.s32 5, %v1406_v19 }
  0x93   :  { %v1123_v1 = vpack.c.bf16 %v178_v59, %v177_v61  ;;  %v1133_v2 = vpack.c.bf16 %v184_v60, %v183_v62  ;;  %v120_v3 = vmul.f32 %v113_v63, %v78_v27  ;;  %v126_v4 = vmul.f32 %v113_v63, %v82_v28 }
  0x94   :  { %v119_v5 = vmul.f32 %v108_v0, %v78_v27  ;;  %v125_v6 = vmul.f32 %v108_v0, %v82_v28  ;;  %v189_v27 = vld [vmem:[%s1592_s3 + $0x10] sm:$0x3f]  ;;  %v389_v28 = vld [vmem:[%s1594_s5] sm:$0xff] }
  0x95   :  { %1124 = vmatpush3.bf16.msra.mxu0 %v1123_v1  ;;  %1134 = vmatpush3.bf16.msra.mxu1 %v1133_v2  ;;  %v1140_v30 = vpack.c.bf16 %v390_v29, %v389_v28  ;;  %v475_v2 = vld [vmem:[%s1596_s7 + $0x10] sm:$0xf]  ;;  %v990_v29 = vld [vmem:[%s1599_s10] ss:$0 sm:$0xff] }
  0x96   :  { %v161_v7 = vpop.permute.xlu1 %160  ;;  %v156_v8 = vpop.permute.xlu0 %155  ;;  %1125 = vmatprep.subr.bf16.mxu0 %v1277_v9  ;;  %1135 = vmatprep.subr.bf16.mxu1 %v1277_v9 }
  0x97   :  { %v168_v10 = vadd.f32 %v161_v7, %v120_v3  ;;  %v174_v11 = vadd.f32 %v161_v7, %v126_v4  ;;  %v167_v12 = vadd.f32 %v156_v8, %v119_v5  ;;  %v173_v13 = vadd.f32 %v156_v8, %v125_v6  ;;  %v562_v3 = vld [vmem:[%s1598_s9] sm:$0xff] }
  0x98   :  { %v985_v5 = vld [vmem:[%s1595_s6] ss:$0 sm:$0xff] }
  0x99   :  { %v180_v15 = vmax.f32 %v168_v10, 0.0  ;;  %v186_v16 = vmax.f32 %v174_v11, 0.0  ;;  %v179_v18 = vmax.f32 %v167_v12, 0.0  ;;  %v185_v20 = vmax.f32 %v173_v13, 0.0  ;;  %v656_v12 = vld [vmem:[%s1593_s4] sm:$0xf] }
  0x9a   :  { %v564_v13 = vld [vmem:[%s1598_s9 + $0x10] sm:$0xf] }
  0x9b   :  { %v1126_v22 = vpack.c.bf16 %v180_v15, %v179_v18  ;;  %v1136_v23 = vpack.c.bf16 %v186_v16, %v185_v20  ;;  %v987_v15 = vld [vmem:[%s1597_s8] ss:$0 sm:$0xff] }
  0x9d   :  { %1128 = vmatpush3.bf16.msk.msra.mxu0 %vm1127_vm3, %v1126_v22  ;;  %1138 = vmatpush3.bf16.msk.msra.mxu1 %vm1127_vm3, %v1136_v23 }
  0x9e   :  { %1139 = vmatprep.subr.bf16.mxu0 %v1277_v9  ;;  %1142 = vmatprep.subr.bf16.mxu1 %v1277_v9 }
  0xa0   :  { %1047 = vmatmul.mubr.msk.f32.vlgmr.msra.gmra.mrb[0].mxu0 %vm190_vm4, %v187_v24  ;;  %1068 = vmatmul.mubr.msk.f32.vlgmr.msra.gmra.mrb[0].mxu1 %vm190_vm4, %v187_v24 }
  0xa1   :  { %1049 = vmatprep.mubr.msk.f32.mxu0 %vm1278_vm0, %v1279_v14  ;;  %1070 = vmatprep.mubr.msk.f32.mxu1 %vm1278_vm0, %v1279_v14 }
  0xa2   :  { %1141 = vmatpush3.bf16.msra.mxu0 %v1140_v30  ;;  %1144 = vmatpush3.bf16.msra.mxu1 %v1143_v33 }
  0xa3   :  { %1145 = vmatprep.subr.bf16.mxu0 %v1277_v9  ;;  %1087 = vmatprep.subr.mxu1 %v1279_v14 }
  0xa4   :  { %1050 = vmatmul.mubr.msk.f32.gmra.mrb[2].mxu0 %vm190_vm4, %v188_v25  ;;  %1071 = vmatmul.mubr.msk.f32.gmra.mrb[2].mxu1 %vm190_vm4, %v188_v25 }
  0xa5   :  { %1052 = vmatprep.mubr.msk.f32.mxu0 %vm1278_vm0, %v1279_v14  ;;  %1073 = vmatprep.mubr.msk.f32.mxu1 %vm1278_vm0, %v1279_v14 }
  0xa6   :  { %1088 = vmatpush3.msk.msra.mxu1 %vm487_vm8, %v475_v2 }
  0xa7   :  { %1148 = vmatprep.subr.bf16.mxu1 %v1277_v9 }
  0xa8   :  { %1053 = vmatmul.mubr.msk.f32.gmra.mrb[4].mxu0 %vm190_vm4, %v189_v27  ;;  %1074 = vmatmul.mubr.msk.f32.gmra.mrb[4].mxu1 %vm190_vm4, %v189_v27 }
  0xa9   :  { %1080 = vmatprep.mubr.msk.f32.mxu0 %vm1278_vm0, %v1279_v14  ;;  %1089 = vmatprep.mubr.msk.f32.mxu1 %vm1278_vm0, %v1279_v14 }
 0x173   :  { %v270_v34 = vpop.f32.mrb[0].mxu0  ;;  %v353_v35 = vpop.f32.mrb[0].mxu1 }
 0x174   :  { %v1048_v36 = vpop.f32.mrb[1].mxu0  ;;  %v1069_v37 = vpop.f32.mrb[1].mxu1  ;;  %v650_v40 = vmax.f32 %v270_v34, 0.0  ;;  %v653_v41 = vmax.f32 %v353_v35, 0.0 }
 0x175   :  { %v830_v36 = vand.u32 127, %v50_v17 }
 0x177   :  { %v275_v38 = vpop.f32.mrb[2].mxu0  ;;  %v358_v39 = vpop.f32.mrb[2].mxu1  ;;  %v1524_v37 = vsub.s32 %v830_v36, %v1406_v19 }
 0x178   :  { %v651_v42 = vmax.f32 %v275_v38, 0.0  ;;  %v654_v43 = vmax.f32 %v358_v39, 0.0  ;;  %v1051_v44 = vpop.f32.mrb[3].mxu0  ;;  %v1072_v45 = vpop.f32.mrb[3].mxu1 }
 0x179   :  { %v851_v44 = vsub.s32 1, %v1406_v19 }
 0x17a   :  { %v1149_v46 = vpack.c.bf16 %v651_v42, %v650_v40  ;;  %v1461_v47 = vpack.c.bf16 %v654_v43, %v653_v41 }
 0x17b   :  { %v280_v48 = vpop.f32.mrb[4].mxu0  ;;  %v1463_v49 = vpop.f32.mrb[4].mxu1 }
 0x17c   :  { %v983_v50 = vmul.f32 -1.442695, %v280_v48  ;;  %v984_v51 = vmul.f32 -1.442695, %v1463_v49  ;;  %v1054_v52 = vpop.f32.mrb[5].mxu0  ;;  %v1075_v53 = vpop.f32.mrb[5].mxu1 }
 0x17d   :  { %v652_v11 = vmax.f32 %v280_v48, 0.0  ;;  %v655_v27 = vmax.f32 %v1463_v49, 0.0 }
 0x17e   :  { %1168 = vpow2.f32 %v983_v50 }
 0x17f   :  { %1170 = vpow2.f32 %v984_v51 }
 0x188   :  { %v1169_v54 = vpop.eup %1168 }
 0x189   :  { %v1171_v55 = vpop.eup %1170  ;;  %v373_v56 = vadd.f32 1.0, %v1169_v54 }
 0x18a   :  { %v374_v57 = vadd.f32 1.0, %v1171_v55 }
 0x18b   :  { %1172 = vrcp.f32 %v373_v56 }
 0x18c   :  { %1174 = vrcp.f32 %v374_v57 }
 0x195   :  { %v1173_v59 = vpop.eup %1172 }
 0x196   :  { %v1175_v60 = vpop.eup %1174  ;;  %v381_v61 = vrot.slane %v1173_v59, 5  ;;  %v814_v23 = vrot.slane %v1173_v59, %v813_v58 }
 0x197   :  { %v382_v62 = vrot.slane %v1175_v60, 4  ;;  %v1467_v63 = vrot.slane %v1175_v60, %v813_v58 }
 0x199   :  { %v384_v0 = vsel %vm383_vm5, %v382_v62, %v381_v61 }
 0x19a   :  { %v386_v1 = vmul.f32 %v384_v0, %v1412_v21  ;;  %v563_v21 = vld [vmem:[%s1598_s9 + $0x8] sm:$0xff]  ;;  %s1282_s9 = smov [#allocation4]  }
 0x19b   :  { %v1146_v4 = vpack.c.bf16 %v563_v21, %v562_v3  ;;  %s934_s10 = sshll.u32 %s1282_s9, 4  ;;  %s935_s10 = int_to_ptr.vmem [resolvable:$true] %s934_s10 }
 0x19c   :  { %1081 = vmatmul.mubr.msk.f32.vlgmr.msra.gmra.mrb[6].mxu0 %vm398_vm6, %v386_v1  ;;  %388 = vst.msk [vmem:[#allocation7] sm:$0x3] %vm387_vm7, %v386_v1  ;;  %s1182_s25 = scalar_lea.vmem %s935_s10, 32  ;;  %p1187_p1 = scmp.lt.s32.totalorder %s935_s10, %s935_s10 }
 0x19d   :  { %1098 = vmatprep.mubr.msk.f32.mxu0 %vm1278_vm0, %v1279_v14  ;;  %1147 = vmatpush3.bf16.msra.mxu0 %v1146_v4  ;;  %p1183_p0 = scmp.ne.s32.totalorder %s935_s10, %s1182_s25  ;;  %p1188_p2 = scmp.lt.s32.totalorder %s1182_s25, %s1182_s25 }
 0x19e   :  { %1096 = vmatprep.subr.mxu0 %v1279_v14 }
 0x19f   :  { %p1189_p3 = por %p1188_p2, %p1187_p1 }
 0x1a1   :  { %1097 = vmatpush3.msk.msra.mxu0 %vm487_vm8, %v564_v13  ;;  %p1190_p4 = pnand %p1189_p3, %p1183_p0 }
 0x1a2   :  { %1151 = vmatprep.subr.bf16.mxu0 %v1277_v9 }
 0x26f   :  { %v468_v6 = vpop.f32.mrb[6].mxu0 }
 0x270   :  { %v469_v7 = vadd.f32 %v985_v5, %v468_v6  ;;  %v1082_v8 = vpop.f32.mrb[7].mxu0 }
 0x272   :  { %v472_v10 = vmax.f32 %v469_v7, 0.0 }
 0x274   :  { %1090 = vmatmul.mubr.msk.f32.vlgmr.msra.gmra.mrb[6].mxu1 %vm483_vm9, %v472_v10 }
 0x275   :  { %1150 = vmatpush3.bf16.msra.mxu1 %v1149_v46  ;;  %1107 = vmatprep.mubr.msk.f32.mxu1 %vm1278_vm0, %v1279_v14 }
 0x276   :  { %1105 = vmatprep.subr.mxu1 %v1279_v14 }
 0x279   :  { %1106 = vmatpush3.msk.msra.mxu1 %vm661_vm10, %v652_v11 }
 0x27a   :  { %1108 = vmatmul.mubr.msk.f32.vlgmr.msra.gmra.mrb[8].mxu1 %vm657_vm11, %v656_v12 }
 0x347   :  { %v557_v16 = vpop.f32.mrb[6].mxu1 }
 0x348   :  { %v558_v18 = vadd.f32 %v987_v15, %v557_v16  ;;  %v1091_v20 = vpop.f32.mrb[7].mxu1 }
 0x34a   :  { %v561_v22 = vmax.f32 %v558_v18, 0.0 }
 0x34c   :  { %1099 = vmatmul.mubr.msk.f32.vlgmr.msra.gmra.mrb[8].mxu0 %vm483_vm9, %v561_v22 }
 0x34d   :  { %v731_v24 = vpop.f32.mrb[8].mxu1  ;;  %1153 = vmatpush3.bf16.msra.mxu0 %v1461_v47  ;;  %1116 = vmatprep.mubr.msk.f32.mxu0 %vm1278_vm0, %v1279_v14 }
 0x34e   :  { %809 = vst.msk [vmem:[#allocation6] sm:$0xf] %vm808_vm12, %v731_v24  ;;  %v819_v9 = vmul.f32 %v814_v23, %v731_v24  ;;  %1114 = vmatprep.subr.mxu0 %v1279_v14  ;;  %v1109_v25 = vpop.f32.mrb[9].mxu1 }
 0x350   :  { %v821_v28 = vsel %vm808_vm12, %v819_v9, 0.0 }
 0x351   :  { %1115 = vmatpush3.msk.msra.mxu0 %vm661_vm10, %v655_v27  ;;  %822 = vadd.xlane.f32.xlu0 %v821_v28 }
 0x352   :  { %1117 = vmatmul.mubr.msk.f32.vlgmr.msra.gmra.mrb[10].mxu0 %vm657_vm11, %v656_v12 }
 0x3de   :  { %v823_v38 = vpop.xlane.xlu0 %822 }
 0x3df   :  { %v834_v40 = vrot.slane %v823_v38, %v1524_v37 }
 0x41f   :  { %v644_v30 = vpop.f32.mrb[8].mxu0 }
 0x420   :  { %v645_v31 = vadd.f32 %v990_v29, %v644_v30  ;;  %v1100_v32 = vpop.f32.mrb[9].mxu0 }
 0x422   :  { %649 = vst.msk [vmem:[#allocation4] sm:$0x3] %vm648_vm13, %v645_v31 }
 0x425   :  { %v804_v14 = vpop.f32.mrb[10].mxu0 }
 0x426   :  { %810 = vst.msk [vmem:[#allocation6 + $0x4] sm:$0xf] %vm808_vm12, %v804_v14  ;;  %v820_v33 = vmul.f32 %v1467_v63, %v804_v14  ;;  %v1118_v34 = vpop.f32.mrb[11].mxu0 }
 0x428   :  { %v824_v35 = vsel %vm808_vm12, %v820_v33, 0.0 }
 0x429   :  { %825 = vadd.xlane.f32.xlu1 %v824_v35 }
 0x4b6   :  { %v826_v39 = vpop.xlane.xlu1 %825 }
 0x4b7   :  { %v838_v41 = vrot.slane %v826_v39, %v1524_v37 }
 0x4b9   :  { %v839_v42 = vsel %vm383_vm5, %v838_v41, %v834_v40 }
 0x4ba   :  { %v841_v43 = vsel %vm648_vm13, %v839_v42, -inf }
 0x4bb   :  { %842 = vmax.xlane.f32.xlu0 %v841_v43 }
 0x548   :  { %v843_v45 = vpop.xlane.xlu0 %842 }
 0x549   :  { %v848_v46 = vrot.slane %v843_v45, %v1416_v26  ;;  %v852_v17 = vrot.slane %v843_v45, %v851_v44 }
 0x54b   :  { %v855_v47 = vsub.f32 %v823_v38, %v848_v46  ;;  %v856_v48 = vsub.f32 %v826_v39, %v852_v17 }
 0x54d   :  { %v857_v49 = vmul.f32 1.442695, %v855_v47  ;;  %v859_v50 = vmul.f32 1.442695, %v856_v48 }
 0x54f   :  { %1176 = vpow2.f32 %v857_v49 }
 0x550   :  { %1178 = vpow2.f32 %v859_v50 }
 0x559   :  { %v1177_v51 = vpop.eup %1176 }
 0x55a   :  { %v1179_v52 = vpop.eup %1178  ;;  %864 = vperm.xlu0 %1166, %v1177_v51  }
 0x55b   :  { %867 = vperm.xlu1 %1167, %v1179_v52  }
 0x5d9   :  { %v865_v53 = vpop.permute.xlu0 %864 }
 0x5da   :  { %v868_v54 = vpop.permute.xlu1 %867  ;;  %v872_v55 = vrot.slane %v865_v53, %v1524_v37 }
 0x5db   :  { %v876_v19 = vrot.slane %v868_v54, %v1524_v37 }
 0x5dd   :  { %v877_v56 = vsel %vm383_vm5, %v876_v19, %v872_v55 }
 0x5de   :  { %v879_v57 = vsel %vm648_vm13, %v877_v56, 0.0 }
 0x5df   :  { %880 = vadd.xlane.f32.xlu1 %v879_v57 }
 0x66c   :  { %v881_v58 = vpop.xlane.xlu1 %880 }
 0x66d   :  { %1180 = vrcp.f32 %v881_v58 }
 0x677   :  { %v1181_v59 = vpop.eup %1180 }
 0x678   :  { %v883_v60 = vmul.f32 %v1181_v59, %v881_v58 }
 0x67a   :  { %v884_v61 = vsub.f32 2.0, %v883_v60 }
 0x67c   :  { %v885_v62 = vmul.f32 %v1181_v59, %v884_v61 }
 0x67e   :  { %v890_v63 = vrot.slane %v885_v62, %v1416_v26  ;;  %v894_v0 = vrot.slane %v885_v62, %v851_v44 }
 0x680   :  { %v897_v1 = vmul.f32 %v1177_v51, %v890_v63  ;;  %v898_v2 = vmul.f32 %v1179_v52, %v894_v0 }
 0x682   :  { %902 = vperm.xlu0 %1166, %v897_v1  }
 0x686   :  { %905 = vperm.xlu0 %1166, %v898_v2  }
 0x687   :  { %1193 = shalt.err (!%p1190_p4)
}
 0x688   :  { %s1194_s28 = scalar_lea.hbm %s1601_s12, 32 }
 0x689   :  { %p1195_p5 = scmp.ne.s32.totalorder %s1601_s12, %s1194_s28  ;;  %p1198_p6 = scmp.lt.u32.totalorder %s1194_s28, %s1601_s12 }
 0x68b   :  { %p1200_p7 = pnand %p1198_p6, %p1195_p5 }
 0x68d   :  { %1203 = shalt.err (!%p1200_p7)
}
 0x68e   :  { %937 = dma.vmem_to_hbm [thread:$0]  %s935_s10, 32, %s1601_s12, [#allocation5]  }
 0x68f   :  { %s1283_s17 = smov [#allocation6]  }
 0x690   :  { %s943_s18 = sshll.u32 %s1283_s17, 4  ;;  %s944_s18 = int_to_ptr.vmem [resolvable:$true] %s943_s18 }
 0x691   :  { %s1204_s19 = scalar_lea.vmem %s944_s18, 128  ;;  %p1209_p9 = scmp.lt.s32.totalorder %s944_s18, %s944_s18 }
 0x692   :  { %p1205_p8 = scmp.ne.s32.totalorder %s944_s18, %s1204_s19  ;;  %p1210_p10 = scmp.lt.s32.totalorder %s1204_s19, %s1204_s19 }
 0x694   :  { %p1211_p11 = por %p1210_p10, %p1209_p9 }
 0x696   :  { %p1212_p12 = pnand %p1211_p11, %p1205_p8 }
 0x698   :  { %1215 = shalt.err (!%p1212_p12)
}
 0x699   :  { %s1216_s2 = scalar_lea.hbm %s1602_s13, 128 }
 0x69a   :  { %p1217_p13 = scmp.ne.s32.totalorder %s1602_s13, %s1216_s2  ;;  %p1220_p0 = scmp.lt.u32.totalorder %s1216_s2, %s1602_s13 }
 0x69c   :  { %p1222_p1 = pnand %p1220_p0, %p1217_p13 }
 0x69e   :  { %1225 = shalt.err (!%p1222_p1)
}
 0x69f   :  { %s1284_s6 = smov 64   ;;  %s1285_s22 = smov 4  }
 0x6a0   :  { %949 = dma.vmem_to_hbm [thread:$0]  %s944_s18, 128, %s1602_s13, [#allocation5], %s1284_s6, %s1284_s6, %s1285_s22  }
 0x6a1   :  { %s1286_s4 = smov [#allocation7]  }
 0x6a2   :  { %s956_s8 = sshll.u32 %s1286_s4, 4  ;;  %s957_s8 = int_to_ptr.vmem [resolvable:$true] %s956_s8 }
 0x6a3   :  { %s1226_s9 = scalar_lea.vmem %s957_s8, 32  ;;  %p1231_p3 = scmp.lt.s32.totalorder %s957_s8, %s957_s8 }
 0x6a4   :  { %p1227_p2 = scmp.ne.s32.totalorder %s957_s8, %s1226_s9  ;;  %p1232_p4 = scmp.lt.s32.totalorder %s1226_s9, %s1226_s9 }
 0x6a6   :  { %p1233_p5 = por %p1232_p4, %p1231_p3 }
 0x6a8   :  { %p1234_p6 = pnand %p1233_p5, %p1227_p2 }
 0x6aa   :  { %1237 = shalt.err (!%p1234_p6)
}
 0x6ab   :  { %s1238_s26 = scalar_lea.hbm %s1603_s14, 32 }
 0x6ac   :  { %p1239_p7 = scmp.ne.s32.totalorder %s1603_s14, %s1238_s26  ;;  %p1242_p8 = scmp.lt.u32.totalorder %s1238_s26, %s1603_s14 }
 0x6ae   :  { %p1244_p9 = pnand %p1242_p8, %p1239_p7 }
 0x6b0   :  { %1247 = shalt.err (!%p1244_p9)
}
 0x6b1   :  { %959 = dma.vmem_to_hbm [thread:$0]  %s957_s8, 32, %s1603_s14, [#allocation8]  }
 0x6b2   :  { %s1287_s15 = smov [#allocation2]  }
 0x6b3   :  { %s924_s16 = sshll.u32 %s1287_s15, 4  ;;  %s925_s16 = int_to_ptr.vmem [resolvable:$true] %s924_s16 }
 0x6b4   :  { %s1248_s5 = scalar_lea.vmem %s925_s16, 32  ;;  %p1253_p11 = scmp.lt.s32.totalorder %s925_s16, %s925_s16 }
 0x6b5   :  { %p1249_p10 = scmp.ne.s32.totalorder %s925_s16, %s1248_s5  ;;  %p1254_p12 = scmp.lt.s32.totalorder %s1248_s5, %s1248_s5 }
 0x6b7   :  { %p1255_p13 = por %p1254_p12, %p1253_p11 }
 0x6b9   :  { %p1256_p0 = pnand %p1255_p13, %p1249_p10 }
 0x701   :  { %v903_v26 = vpop.permute.xlu0 %902 }
 0x702   :  { %v910_v21 = vrot.slane %v903_v26, %v1524_v37 }
 0x705   :  { %v906_v3 = vpop.permute.xlu0 %905 }
 0x706   :  { %v914_v4 = vrot.slane %v906_v3, %v1524_v37 }
 0x708   :  { %v915_v5 = vsel %vm383_vm5, %v914_v4, %v910_v21 }
 0x709   :  { %917 = vst.msk [vmem:[#allocation2] sm:$0x3] %vm648_vm13, %v915_v5 }
 0x70a   :  { %1259 = shalt.err (!%p1256_p0)
}
 0x70b   :  { %s1260_s18 = scalar_lea.hbm %s1600_s11, 32 }
 0x70c   :  { %p1261_p1 = scmp.ne.s32.totalorder %s1600_s11, %s1260_s18  ;;  %p1264_p2 = scmp.lt.u32.totalorder %s1260_s18, %s1600_s11 }
 0x70e   :  { %p1266_p3 = pnand %p1264_p2, %p1261_p1 }
 0x710   :  { %1269 = shalt.err (!%p1266_p3)
}
 0x711   :  { %927 = dma.vmem_to_hbm [thread:$0]  %s925_s16, 32, %s1600_s11, [#allocation3]  }
 0x712   :  { %1270 = dma.done.wait [#allocation3], 32  }
 0x713   :  { %1271 = vsyncadd [#allocation3], 4294967264 }
 0x714   :  { %1272 = dma.done.wait [#allocation5], 160  }
 0x715   :  { %1273 = vsyncadd [#allocation5], 4294967136 }
 0x716   :  { %1274 = dma.done.wait [#allocation8], 32  }
 0x717   :  { %1275 = vsyncadd [#allocation8], 4294967264 }
 0x718   :  { %972 = vsyncpa [#allocation3], 1 }
 0x719   :  { %973 = vsyncpa [#allocation5], 1 }
 0x71a   :  { %974 = vsyncpa [#allocation8], 1 }

</bundles_post_ra>
